<compile_context>
chip_gen: v6e
topology: v6e:2x2x1
jax: 0.10.0
libtpu: 0.0.40
codegen_flags: <defaults>
</compile_context>

<pallas_src>
import math

import jax
import jax.numpy as jnp
from jax.experimental import pallas as pl
from jax.experimental.pallas import tpu as pltpu

_LANE = 128  # TPU lane width: pad the output feature dim to this for dense stores


def _linear_kernel(state_ref, wt_ref, b_ref, o_ref):
    # state_ref: (batch, 1, n_in)      -- squeeze dim 1 + cast to f32 in-kernel
    # wt_ref:    (n_in, n_pad)         -- pre-transposed, lane-padded weight (K, N)
    # b_ref:     (1, n_pad)            -- lane-padded bias row
    # o_ref:     (batch, n_pad) f32    -- lane-dense output
    x = state_ref[:, 0, :].astype(jnp.float32)            # (batch, n_in)
    w = wt_ref[...].astype(jnp.float32)                    # (n_in, n_pad)
    # MXU matmul, f32 accumulation; RHS already in (K, N) layout -> no XLU transpose.
    y = jnp.dot(x, w, preferred_element_type=jnp.float32)  # (batch, n_pad)
    o_ref[...] = (y + b_ref[...].astype(jnp.float32)).astype(o_ref.dtype)


def prepare_linear_params(weight, bias):
    """One-time layout prep: transpose PyTorch (n_out, n_in) weight to MXU-native
    (n_in, n_pad) with the output dim zero-padded to a multiple of 128, and pack
    the bias as a (1, n_pad) row."""
    n_out, n_in = weight.shape
    n_pad = ((n_out + _LANE - 1) // _LANE) * _LANE
    w_t = jnp.zeros((n_in, n_pad), dtype=jnp.float32).at[:, :n_out].set(
        weight.astype(jnp.float32).T
    )
    b2 = jnp.zeros((1, n_pad), dtype=jnp.float32).at[0, :n_out].set(
        bias.astype(jnp.float32)
    )
    return w_t, b2, n_out


def linear_network_forward_prepared(state, w_t, b2, n_out):
    """Forward pass with pre-prepared (transposed + lane-padded) params."""
    batch = state.shape[0]
    n_pad = w_t.shape[1]

    out_padded = pl.pallas_call(
        _linear_kernel,
        out_shape=jax.ShapeDtypeStruct((batch, n_pad), jnp.float32),
        in_specs=[
            pl.BlockSpec(memory_space=pltpu.MemorySpace.VMEM),  # state (full array)
            pl.BlockSpec(memory_space=pltpu.MemorySpace.VMEM),  # weight (K, n_pad)
            pl.BlockSpec(memory_space=pltpu.MemorySpace.VMEM),  # bias (1, n_pad)
        ],
        out_specs=pl.BlockSpec(memory_space=pltpu.MemorySpace.VMEM),
    )(state, w_t, b2)

    # Drop the lane padding (cheap XLA slice; fuses away inside a larger jit).
    return out_padded[:, :n_out]


def linear_network_forward(state, weight, bias):
    """Forward pass of LinearNetwork.

    state:  (batch, 1, n_input)  any float dtype
    weight: (n_output, n_input)  (PyTorch nn.Linear layout)
    bias:   (n_output,)
    returns (batch, n_output) float32
    """
    w_t, b2, n_out = prepare_linear_params(weight, bias)
    return linear_network_forward_prepared(state, w_t, b2, n_out)


def init_linear_params(key, n_input, n_output):
    """Deterministic init matching PyTorch nn.Linear default:
    U(-1/sqrt(n_input), 1/sqrt(n_input)) for both weight and bias."""
    k_w, k_b = jax.random.split(key)
    bound = 1.0 / math.sqrt(n_input)
    weight = jax.random.uniform(
        k_w, (n_output, n_input), minval=-bound, maxval=bound, dtype=jnp.float32
    )
    bias = jax.random.uniform(
        k_b, (n_output,), minval=-bound, maxval=bound, dtype=jnp.float32
    )
    return weight, bias


if __name__ == "__main__":
    # Small shapes consistent with the module: input_shape=(..., n_input),
    # output_shape=(n_output,). state carries the singleton dim 1 that forward
    # squeezes out.
    batch, n_input, n_output = 8, 32, 16

    key = jax.random.PRNGKey(0)
    k_state, k_params = jax.random.split(key)

    state = jax.random.normal(k_state, (batch, 1, n_input), dtype=jnp.float32)
    weight, bias = init_linear_params(k_params, n_input, n_output)

    # One-time param layout prep (transpose + lane padding), then the kernel.
    w_t, b2, n_out = prepare_linear_params(weight, bias)
    out = linear_network_forward_prepared(state, w_t, b2, n_out)
    out = jax.block_until_ready(out)

    # Reference check in plain JAX.
    ref = jnp.squeeze(state, axis=1).astype(jnp.float32) @ weight.T + bias
    assert out.shape == (batch, n_output)
    assert out.dtype == jnp.float32
    assert jnp.allclose(out, ref, atol=1e-5, rtol=1e-5)

    print("KERNEL_OK")
</pallas_src>

<mosaic_0001>
module attributes {stable_mosaic.version = 11 : i64} {
  func.func @_linear_kernel(%arg0: memref<8x1x32xf32, #tpu.memory_space<vmem>>, %arg1: memref<32x128xf32, #tpu.memory_space<vmem>>, %arg2: memref<1x128xf32, #tpu.memory_space<vmem>>, %arg3: memref<8x128xf32, #tpu.memory_space<vmem>>) attributes {dimension_semantics = [], scalar_prefetch = 0 : i64, scratch_operands = 0 : i64, tpu.core_type = #tpu.core_type<tc>} {
    %c0 = arith.constant 0 : index
    %c0_0 = arith.constant 0 : index
    %c0_1 = arith.constant 0 : index
    %0 = vector.load %arg0[%c0, %c0_0, %c0_1] : memref<8x1x32xf32, #tpu.memory_space<vmem>>, vector<8x1x32xf32>
    %1 = vector.shape_cast %0 : vector<8x1x32xf32> to vector<8x32xf32>
    %c0_2 = arith.constant 0 : index
    %c0_3 = arith.constant 0 : index
    %2 = vector.load %arg1[%c0_2, %c0_3] : memref<32x128xf32, #tpu.memory_space<vmem>>, vector<32x128xf32>
    %cst = arith.constant dense<0.000000e+00> : vector<8x128xf32>
    %3 = tpu.matmul %1, %2, %cst {dimension_numbers = #tpu.dot_dimension_numbers<[1], [0], [0], [1], [0, 0, 1, 1], [], []>} : vector<8x32xf32>, vector<32x128xf32>, vector<8x128xf32> -> vector<8x128xf32>
    %c0_4 = arith.constant 0 : index
    %c0_5 = arith.constant 0 : index
    %4 = vector.load %arg2[%c0_4, %c0_5] : memref<1x128xf32, #tpu.memory_space<vmem>>, vector<1x128xf32>
    %5 = vector.broadcast %4 : vector<1x128xf32> to vector<8x128xf32>
    %6 = arith.addf %3, %5 : vector<8x128xf32>
    %c0_6 = arith.constant 0 : index
    %c0_7 = arith.constant 0 : index
    %7 = vector.load %arg3[%c0_6, %c0_7] : memref<8x128xf32, #tpu.memory_space<vmem>>, vector<8x128xf32>
    tpu.vector_store %arg3[%c0_6, %c0_7], %6 {strides = array<i32>} : memref<8x128xf32, #tpu.memory_space<vmem>>, vector<8x128xf32>,
    return
  }
}

</mosaic_0001>

<bundles_post_ra>
// kernel: tpu_custom_call.1
= control target key start
LH: loop header
LB: loop body
LE: loop exit
PB: predicated region body
PF: predicated region fallthrough
CT: control target
= control target key end

     0   :  { %8 = vsyncpa [#allocation3], 0  ;;  %s345_s0 = inlined_call_operand.hbm [shape: f32[8,1,32], index: 0, kind: input, shape index: {}]   ;;  %s346_s1 = inlined_call_operand.hbm [shape: f32[32,128], index: 1, kind: input, shape index: {}]   ;;  %s347_s2 = inlined_call_operand.vmem [shape: f32[1,128], index: 2, kind: input, shape index: {}]   ;;  %s348_s3 = inlined_call_operand.hbm [shape: f32[8,128], index: 3, kind: output, shape index: {}]  }
   0x1   :  { %9 = vsyncpa [#allocation6], 0 }
   0x2   :  { %10 = vsyncpa [#allocation4], 0  ;;  %s303_s12 = smov [#allocation2]  }
   0x3   :  { %s16_s13 = sshll.u32 %s303_s12, 4  ;;  %s17_s13 = int_to_ptr.vmem [resolvable:$true] %s16_s13 }
   0x4   :  { %s245_s14 = scalar_lea.vmem %s17_s13, 128  ;;  %p250_p1 = scmp.lt.s32.totalorder %s17_s13, %s17_s13 }
   0x5   :  { %p246_p0 = scmp.ne.s32.totalorder %s17_s13, %s245_s14  ;;  %p251_p2 = scmp.lt.s32.totalorder %s245_s14, %s245_s14 }
   0x7   :  { %p252_p3 = por %p251_p2, %p250_p1 }
   0x9   :  { %p253_p4 = pnand %p252_p3, %p246_p0 }
   0xb   :  { %256 = shalt.err (!%p253_p4)
}
   0xc   :  { %s304_s15 = smov 16   ;;  %s305_s16 = smov 1  }
   0xd   :  { %22 = dma.hbm_to_vmem [thread:$0]  %s345_s0, 128, %s17_s13, [#allocation3], %s304_s15, %s304_s15, %s305_s16  }
   0xe   :  { %s306_s19 = smov [#allocation5]  }
   0xf   :  { %s28_s20 = sshll.u32 %s306_s19, 4  ;;  %s29_s20 = int_to_ptr.vmem [resolvable:$true] %s28_s20 }
  0x10   :  { %s265_s21 = scalar_lea.vmem %s29_s20, 512  ;;  %p270_p6 = scmp.lt.s32.totalorder %s29_s20, %s29_s20 }
  0x11   :  { %p266_p5 = scmp.ne.s32.totalorder %s29_s20, %s265_s21  ;;  %p271_p7 = scmp.lt.s32.totalorder %s265_s21, %s265_s21 }
  0x13   :  { %p272_p8 = por %p271_p7, %p270_p6 }
  0x15   :  { %p273_p9 = pnand %p272_p8, %p266_p5 }
  0x17   :  { %276 = shalt.err (!%p273_p9)
}
  0x18   :  { %s307_s22 = smov 128   ;;  %s308_s23 = smov 8  }
  0x19   :  { %34 = dma.hbm_to_vmem [thread:$0]  %s346_s1, 512, %s29_s20, [#allocation6], %s307_s22, %s307_s22, %s308_s23  }
  0x1a   :  { %297 = dma.done.wait [#allocation3], 128  }
  0x1b   :  { %298 = vsyncadd [#allocation3], 4294967168 }
  0x1c   :  { %299 = dma.done.wait [#allocation6], 512  }
  0x1d   :  { %300 = vsyncadd [#allocation6], 4294966784  ;;  %v77_v0 = vlaneseq  ;;  %v309_v1 = vmov 0.0   ;;  %vm310_vm0 = vmmov 0   ;;  %v311_v2 = vmov 1966171168  }
  0x1e   :  { %216 = vmatprep.subr.mxu0 %v309_v1  ;;  %224 = vmatprep.mubr.msk.f32.mxu0 %vm310_vm0, %v309_v1  ;;  %v75_v3 = vunpack.c.l.s4 %v311_v2  ;;  %v54_v6 = vld [vmem:[#allocation5 + $0x18] sm:$0xff]  ;;  %v53_v7 = vld [vmem:[#allocation5 + $0x10] sm:$0xff]  ;;  %v52_v9 = vld [vmem:[#allocation5 + $0x8] sm:$0xff]  ;;  %vm119_vm1 = vcmask 261120   ;;  %s312_s26 = smov [#allocation7]  }
  0x1f   :  { %v78_v5 = vshrl.u32 %v77_v0, 7  ;;  %217 = vmatpush3.msra.mxu0 %v54_v6  ;;  %v43_v10 = vld [vmem:[#allocation2] sm:$0x1]  ;;  %v44_v11 = vld [vmem:[#allocation2 + $0x1] sm:$0x1]  ;;  %v51_v20 = vld [vmem:[#allocation5] sm:$0xff] }
  0x20   :  { %v76_v4 = vunpack.c.0.s8 %v75_v3  ;;  %218 = vmatprep.subr.mxu0 %v309_v1  ;;  %v45_v12 = vld [vmem:[#allocation2 + $0x2] sm:$0x1]  ;;  %v46_v13 = vld [vmem:[#allocation2 + $0x3] sm:$0x1]  ;;  %v47_v14 = vld [vmem:[#allocation2 + $0x4] sm:$0x1]  ;;  %v70_v15 = vcombine.low %v43_v10, %v44_v11 }
  0x21   :  { %219 = vmatpush3.msra.mxu0 %v53_v7  ;;  %v48_v16 = vld [vmem:[#allocation2 + $0x5] sm:$0x1]  ;;  %v49_v17 = vld [vmem:[#allocation2 + $0x6] sm:$0x1]  ;;  %v50_v18 = vld [vmem:[#allocation2 + $0x7] sm:$0x1]  ;;  %v71_v19 = vcombine.low %v45_v12, %v46_v13 }
  0x22   :  { %v79_v8 = vsub.s32 %v76_v4, %v78_v5  ;;  %220 = vmatprep.subr.mxu0 %v309_v1  ;;  %v72_v21 = vcombine.low %v47_v14, %v48_v16  ;;  %v73_v22 = vcombine.low %v49_v17, %v50_v18  ;;  %v209_v32 = vld [vmem:[%s347_s2] ss:$0 sm:$0xff]  ;;  %s199_s27 = sshll.u32 %s312_s26, 4  ;;  %s200_s27 = int_to_ptr.vmem [resolvable:$true] %s199_s27 }
  0x23   :  { %221 = vmatpush3.msra.mxu0 %v52_v9  ;;  %s277_s28 = scalar_lea.vmem %s200_s27, 128  ;;  %p282_p11 = scmp.lt.s32.totalorder %s200_s27, %s200_s27 }
  0x24   :  { %v80_v23 = vrot.slane %v70_v15, %v79_v8  ;;  %v87_v24 = vrot.slane %v71_v19, %v79_v8  ;;  %222 = vmatprep.subr.mxu0 %v309_v1  ;;  %v94_v25 = vrot.slane %v72_v21, %v79_v8  ;;  %v101_v26 = vrot.slane %v73_v22, %v79_v8  ;;  %p278_p10 = scmp.ne.s32.totalorder %s200_s27, %s277_s28  ;;  %p283_p12 = scmp.lt.s32.totalorder %s277_s28, %s277_s28 }
  0x25   :  { %223 = vmatpush3.msra.mxu0 %v51_v20 }
  0x26   :  { %v102_v27 = vcombine.low %v80_v23, %v87_v24  ;;  %v103_v28 = vcombine.low %v94_v25, %v101_v26  ;;  %p284_p13 = por %p283_p12, %p282_p11 }
  0x28   :  { %v110_v29 = vrot.slane %v102_v27, %v79_v8  ;;  %v117_v30 = vrot.slane %v103_v28, %v79_v8  ;;  %p285_p0 = pnand %p284_p13, %p278_p10 }
  0x2a   :  { %v118_v31 = vcombine.low %v110_v29, %v117_v30 }
  0x2c   :  { %225 = vmatmul.mubr.msk.f32.vlgmr.msra.gmra.mxu0 %vm119_vm1, %v118_v31 }
  0xec   :  { %v188_v33 = vpop.f32.mrf.mxu0 }
  0xed   :  { %v189_v34 = vadd.f32 %v209_v32, %v188_v33 }
  0xee   :  { %v226_v35 = vpop.f32.mrf.mxu0 }
  0xef   :  { %192 = vst [vmem:[#allocation7] sm:$0xff] %v189_v34 }
  0xf0   :  { %288 = shalt.err (!%p285_p0)
}
  0xf1   :  { %202 = dma.vmem_to_hbm [thread:$0]  %s200_s27, 128, %s348_s3, [#allocation4]  }
  0xf2   :  { %301 = dma.done.wait [#allocation4], 128  }
  0xf3   :  { %302 = vsyncadd [#allocation4], 4294967168 }
  0xf4   :  { %206 = vsyncpa [#allocation3], 1 }
  0xf5   :  { %207 = vsyncpa [#allocation6], 1 }
  0xf6   :  { %208 = vsyncpa [#allocation4], 1 }

</bundles_post_ra>
